<compile_context>
chip_gen: v7x
topology: tpu7x:2x2x1
jax: 0.10.0
libtpu: 0.0.40
codegen_flags: <defaults>
</compile_context>

<pallas_src>
import functools

import jax
import jax.numpy as jnp
from jax.experimental import pallas as pl
from jax.experimental.pallas import tpu as pltpu


def _round_up(a, b):
    return (a + b - 1) // b * b


def _token_classifier_kernel(x_ref, d_ref, w_ref, wd_ref, b_ref, o_ref):
    # x_ref:  (TM, D)      hidden-state rows for this tile
    # d_ref:  (TM, 1)      subword-dummy feature column for this tile
    # w_ref:  (D, Npad)    pre-transposed, 128-padded stacked head weights (VMEM-resident)
    # wd_ref: (1, Npad)    weight row for the dummy feature (resident)
    # b_ref:  (1, Npad)    bias (resident)
    # o_ref:  (TM, Npad)   lane-dense output tile
    acc = jnp.dot(x_ref[...], w_ref[...], preferred_element_type=jnp.float32)
    # dummy-feature term + bias in f32 (VALU work rides under the MXU / DMA)
    acc = acc + (d_ref[...].astype(jnp.float32) * wd_ref[...].astype(jnp.float32)
                 + b_ref[...].astype(jnp.float32))
    o_ref[...] = acc.astype(o_ref.dtype)


def prepare_token_classifier_params(weights, biases):
    """One-time weight preprocessing (hoist out of the per-forward path).

    weights: (L, N, D+1) per-head nn.Linear weights, PyTorch layout
    biases:  (L, N)
    Returns (w_t, w_d, b_p): (D, n_pad), (1, n_pad), (1, n_pad) with n_pad = round_up(L*N, 128).
    """
    L, N, K = weights.shape
    D = K - 1
    NL = L * N
    n_pad = max(128, _round_up(NL, 128))
    w_all = weights.reshape(NL, K)
    # hidden part, transposed once to matmul-native (D, n_pad) layout
    w_t = jnp.pad(jnp.transpose(w_all[:, :D]), ((0, 0), (0, n_pad - NL)))
    w_d = jnp.pad(w_all[:, D].reshape(1, NL), ((0, 0), (0, n_pad - NL)))
    b_p = jnp.pad(biases.reshape(1, NL), ((0, 0), (0, n_pad - NL)))
    return w_t, w_d, b_p


def _pick_tm(M, D, n_pad, itemsize, tm_max):
    # Conservative VMEM budget (everything double-buffered, out tile budgeted as f32 for
    # the accumulator) so the same tiling fits v7x's 32 MiB scoped default as well as v5e/v6e.
    budget = 24 * 1024 * 1024
    resident = 2 * (D + 2) * n_pad * itemsize                  # w_t + w_d + b (double-buffered)
    per_row = 2 * (D + 1) * itemsize + 2 * n_pad * 4           # x + d + out per row
    tm = min(tm_max, max(8, (budget - resident) // max(per_row, 1)))
    # Keep >= 2 grid steps so ("parallel",) can shard across v7x's two TensorCores.
    tm = min(tm, _round_up(pl.cdiv(M, 2), 8))
    tm = max(8, (tm // 8) * 8)
    return int(tm)


@functools.partial(jax.jit, static_argnames=("heads", "tm_max"))
def _token_classifier_forward(hidden, dummies, w_t, w_d, b_p, *, heads, tm_max=1024):
    B, S, D = hidden.shape
    L, N = heads
    NL = L * N
    Dw, n_pad = w_t.shape
    assert Dw == D, "prepared weights do not match hidden dim"
    M = B * S
    itemsize = jnp.dtype(hidden.dtype).itemsize

    x = hidden.reshape(M, D)                                   # free reshape, no copy
    d = dummies.reshape(M, 1).astype(hidden.dtype)

    tm = _pick_tm(M, D, n_pad, itemsize, tm_max)
    grid = (pl.cdiv(M, tm),)                                   # ragged last tile, no row padding

    flops = 2 * M * D * n_pad
    bytes_accessed = itemsize * (M * D + M + (D + 2) * n_pad + M * n_pad)
    vmem_needed = (2 * tm * (D + 1) * itemsize                 # x + d tiles (double-buffered)
                   + 2 * tm * n_pad * 4                        # out tile / f32 accumulator
                   + 2 * (D + 2) * n_pad * itemsize)           # resident weights + bias
    vmem_limit = int(min(48 * 1024 * 1024,
                         max(vmem_needed + (4 << 20), 16 * 1024 * 1024)))

    out = pl.pallas_call(
        _token_classifier_kernel,
        out_shape=jax.ShapeDtypeStruct((M, n_pad), hidden.dtype),
        grid_spec=pl.GridSpec(
            grid=grid,
            in_specs=[
                pl.BlockSpec((tm, D), lambda i: (i, 0)),       # x: tiled over M, pipelined
                pl.BlockSpec((tm, 1), lambda i: (i, 0)),       # dummy column: tiled over M
                pl.BlockSpec((D, n_pad), lambda i: (0, 0)),    # weight: VMEM-resident
                pl.BlockSpec((1, n_pad), lambda i: (0, 0)),    # dummy-weight row: resident
                pl.BlockSpec((1, n_pad), lambda i: (0, 0)),    # bias: resident
            ],
            out_specs=pl.BlockSpec((tm, n_pad), lambda i: (i, 0)),
        ),
        compiler_params=pltpu.CompilerParams(
            dimension_semantics=("parallel",),                 # shards M across v7x's two TCs
            vmem_limit_bytes=vmem_limit,
        ),
        cost_estimate=pl.CostEstimate(
            flops=flops, bytes_accessed=bytes_accessed, transcendentals=0),
    )(x, d, w_t, w_d, b_p)

    # De-pad / split per head INSIDE the same jit so XLA fuses it with the kernel output copy.
    logits_all = out[:, :NL].reshape(B, S, L, N)
    return [logits_all[:, :, i, :] for i in range(L)]


def token_classifier_heads(hidden, dummies, weights, biases, *, tm_max=1024):
    """Convenience wrapper: prep weights + run all classification heads.

    hidden:  (B, S, D)   last_hidden_state (dropout is identity at inference)
    dummies: (B, S)      subword_dummies (appended as the last input feature)
    weights: (L, N, D+1) per-head nn.Linear weights, PyTorch layout
    biases:  (L, N)
    Returns list of L arrays, each (B, S, N) — logits per classification layer.
    """
    L, N, _ = weights.shape
    w_t, w_d, b_p = prepare_token_classifier_params(weights, biases)
    return _token_classifier_forward(hidden, dummies, w_t, w_d, b_p,
                                     heads=(L, N), tm_max=tm_max)


if __name__ == "__main__":
    # Small shapes consistent with the module's forward:
    #   batch=2, seq=8, embedding_dim=32 (-> in_features=33), num_labels=6, 2 columns/heads.
    B, S, D, N, L = 2, 8, 32, 6, 2

    key = jax.random.PRNGKey(0)
    kh, kd, kw, kb = jax.random.split(key, 4)

    hidden = jax.random.normal(kh, (B, S, D), dtype=jnp.float32)
    # subword dummies are 0/1 indicator features
    dummies = jax.random.bernoulli(kd, p=0.5, shape=(B, S)).astype(jnp.float32)

    # nn.Linear-style init (Kaiming-uniform-like bound) for each head
    bound = 1.0 / jnp.sqrt(D + 1)
    weights = jax.random.uniform(kw, (L, N, D + 1), dtype=jnp.float32,
                                 minval=-bound, maxval=bound)
    biases = jax.random.uniform(kb, (L, N), dtype=jnp.float32,
                                minval=-bound, maxval=bound)

    logits = token_classifier_heads(hidden, dummies, weights, biases)
    logits = jax.block_until_ready(logits)

    # Plain-JAX reference: logits_i = cat(hidden, dummies[...,None]) @ W_i.T + b_i
    x_cat = jnp.concatenate([hidden, dummies[..., None]], axis=-1)  # (B, S, D+1)
    ok = True
    for i in range(L):
        ref = jnp.einsum("bsk,nk->bsn", x_cat, weights[i]) + biases[i]
        ok = ok and logits[i].shape == (B, S, N)
        ok = ok and bool(jnp.allclose(logits[i], ref, atol=1e-5, rtol=1e-5))
    assert ok, "Pallas kernel output does not match reference"

    print("KERNEL_OK")
</pallas_src>

<mosaic_0001>
module attributes {stable_mosaic.version = 11 : i64} {
  func.func @_token_classifier_kernel(%arg0: i32, %arg1: memref<8x32xf32, #tpu.memory_space<vmem>>, %arg2: memref<8x1xf32, #tpu.memory_space<vmem>>, %arg3: memref<32x128xf32, #tpu.memory_space<vmem>>, %arg4: memref<1x128xf32, #tpu.memory_space<vmem>>, %arg5: memref<1x128xf32, #tpu.memory_space<vmem>>, %arg6: memref<8x128xf32, #tpu.memory_space<vmem>>) attributes {dimension_semantics = [#tpu.dimension_semantics<parallel>], iteration_bounds = array<i64: 2>, scalar_prefetch = 0 : i64, scratch_operands = 0 : i64, tpu.core_type = #tpu.core_type<tc>, window_params = [{transform_indices = @transform_0, window_bounds = array<i64: 8, 32>}, {transform_indices = @transform_1, window_bounds = array<i64: 8, 1>}, {pipeline_mode = #tpu.pipeline_mode<synchronous>, transform_indices = @transform_2, window_bounds = array<i64: 32, 128>}, {pipeline_mode = #tpu.pipeline_mode<synchronous>, transform_indices = @transform_3, window_bounds = array<i64: 1, 128>}, {pipeline_mode = #tpu.pipeline_mode<synchronous>, transform_indices = @transform_4, window_bounds = array<i64: 1, 128>}, {transform_indices = @transform_5, window_bounds = array<i64: 8, 128>}]} {
    %c0 = arith.constant 0 : index
    %c0_0 = arith.constant 0 : index
    %0 = vector.load %arg1[%c0, %c0_0] : memref<8x32xf32, #tpu.memory_space<vmem>>, vector<8x32xf32>
    %c0_1 = arith.constant 0 : index
    %c0_2 = arith.constant 0 : index
    %1 = vector.load %arg3[%c0_1, %c0_2] : memref<32x128xf32, #tpu.memory_space<vmem>>, vector<32x128xf32>
    %cst = arith.constant dense<0.000000e+00> : vector<8x128xf32>
    %2 = tpu.matmul %0, %1, %cst {dimension_numbers = #tpu.dot_dimension_numbers<[1], [0], [0], [1], [0, 0, 1, 1], [], []>} : vector<8x32xf32>, vector<32x128xf32>, vector<8x128xf32> -> vector<8x128xf32>
    %c0_3 = arith.constant 0 : index
    %c0_4 = arith.constant 0 : index
    %3 = vector.load %arg2[%c0_3, %c0_4] : memref<8x1xf32, #tpu.memory_space<vmem>>, vector<8x1xf32>
    %c0_5 = arith.constant 0 : index
    %c0_6 = arith.constant 0 : index
    %4 = vector.load %arg4[%c0_5, %c0_6] : memref<1x128xf32, #tpu.memory_space<vmem>>, vector<1x128xf32>
    %5 = vector.broadcast %3 : vector<8x1xf32> to vector<8x128xf32>
    %6 = vector.broadcast %4 : vector<1x128xf32> to vector<8x128xf32>
    %7 = arith.mulf %5, %6 : vector<8x128xf32>
    %c0_7 = arith.constant 0 : index
    %c0_8 = arith.constant 0 : index
    %8 = vector.load %arg5[%c0_7, %c0_8] : memref<1x128xf32, #tpu.memory_space<vmem>>, vector<1x128xf32>
    %9 = vector.broadcast %8 : vector<1x128xf32> to vector<8x128xf32>
    %10 = arith.addf %7, %9 : vector<8x128xf32>
    %11 = arith.addf %2, %10 : vector<8x128xf32>
    %c0_9 = arith.constant 0 : index
    %c0_10 = arith.constant 0 : index
    %12 = vector.load %arg6[%c0_9, %c0_10] : memref<8x128xf32, #tpu.memory_space<vmem>>, vector<8x128xf32>
    tpu.vector_store %arg6[%c0_9, %c0_10], %11 {strides = array<i32>} : memref<8x128xf32, #tpu.memory_space<vmem>>, vector<8x128xf32>,
    return
  }
  func.func @transform_0(%arg0: i32) -> (i32, i32) {
    %c0_i32 = arith.constant 0 : i32
    %c0_i32_0 = arith.constant 0 : i32
    return %arg0, %c0_i32 : i32, i32
  }
  func.func @transform_1(%arg0: i32) -> (i32, i32) {
    %c0_i32 = arith.constant 0 : i32
    %c0_i32_0 = arith.constant 0 : i32
    return %arg0, %c0_i32 : i32, i32
  }
  func.func @transform_2(%arg0: i32) -> (i32, i32) {
    %c0_i32 = arith.constant 0 : i32
    %c0_i32_0 = arith.constant 0 : i32
    %c0_i32_1 = arith.constant 0 : i32
    return %c0_i32, %c0_i32_0 : i32, i32
  }
  func.func @transform_3(%arg0: i32) -> (i32, i32) {
    %c0_i32 = arith.constant 0 : i32
    %c0_i32_0 = arith.constant 0 : i32
    %c0_i32_1 = arith.constant 0 : i32
    return %c0_i32, %c0_i32_0 : i32, i32
  }
  func.func @transform_4(%arg0: i32) -> (i32, i32) {
    %c0_i32 = arith.constant 0 : i32
    %c0_i32_0 = arith.constant 0 : i32
    %c0_i32_1 = arith.constant 0 : i32
    return %c0_i32, %c0_i32_0 : i32, i32
  }
  func.func @transform_5(%arg0: i32) -> (i32, i32) {
    %c0_i32 = arith.constant 0 : i32
    %c0_i32_0 = arith.constant 0 : i32
    return %arg0, %c0_i32 : i32, i32
  }
}

</mosaic_0001>

<bundles_post_ra>
// kernel: _token_classifier_forward.1
= control target key start
LH: loop header
LB: loop body
LE: loop exit
PB: predicated region body
PF: predicated region fallthrough
CT: control target
= control target key end

     0   :  { %10 = vsyncpa [#allocation3], 0  ;;  %s571_s18 = smov 0   ;;  %s636_s0 = inlined_call_operand.vmem [shape: f32[16,32], index: 0, kind: input, shape index: {}]   ;;  %s637_s1 = inlined_call_operand.vmem [shape: f32[16,1], index: 1, kind: input, shape index: {}]   ;;  %s638_s2 = inlined_call_operand.hbm [shape: f32[32,128], index: 2, kind: input, shape index: {}]   ;;  %s639_s3 = inlined_call_operand.vmem [shape: f32[1,128], index: 3, kind: input, shape index: {}]   ;;  %s640_s4 = inlined_call_operand.vmem [shape: f32[1,128], index: 4, kind: input, shape index: {}]   ;;  %s641_s5 = inlined_call_operand.vmem [shape: f32[16,128], index: 5, kind: output, shape index: {}]  }
   0x1 LB: > { %s577_s19 = sadd.s32 4294967295, %s532_s18   ;;  %p433_p0 = scmp.ge.s32.totalorder %s532_s18, 1  ;;  %s532_s18 = sphi %s571_s18, %s16_s18  }
   0x2   : > { %p162_p1 = scmp.lt.s32.totalorder %s532_s18, 3  ;;  %s534_s20 = smov [#allocation2]  }
   0x3   : > { %s174_s21 = sshll.u32 %s534_s20, 4  ;;  %p642_p3 = scmp.eq.s32.totalorder %s577_s19, 0  ;;  %s175_s21 = int_to_ptr.vmem [resolvable:$true] %s174_s21 }
   0x4   : > { %p581_p2 = pnand %p433_p0, %p162_p1  ;;  %s494_s26 = scalar_lea.hbm %s638_s2, 512 }
   0x5   : > { %p495_p6 = scmp.ne.s32.totalorder %s638_s2, %s494_s26  ;;  %p501_p10 = scmp.lt.u32.totalorder %s494_s26, %s638_s2 }
   0x6   : > { %s644_s22 = scalar_select %p581_p2, 1, 0 }
   0x7   : > { %p472_p4 = pneg %p581_p2 }
   0x9   : > { %p590_p5 = pnand %p642_p3, %p472_p4 }
   0xb   : > { %p496_p7 = pneg %p590_p5 }
   0xd   : > { %p497_p8 = pnand %p496_p7, %p495_p6 }
   0xf   : > { %p498_p9 = pneg %p497_p8 }
  0x11   : > { %p503_p11 = pnand %p501_p10, %p498_p9 }
  0x13   : > { %506 = shalt.err (!%p503_p11)
}
  0x14   : > { %s507_s6 = scalar_lea.vmem %s175_s21, 512  ;;  %p515_p1 = scmp.lt.s32.totalorder %s175_s21, %s175_s21 }
  0x15   : > { %p508_p12 = scmp.ne.s32.totalorder %s175_s21, %s507_s6  ;;  %p516_p4 = scmp.lt.s32.totalorder %s507_s6, %s507_s6 }
  0x17   : > { %p510_p13 = pnand %p508_p12, %p496_p7  ;;  %p517_p3 = por %p516_p4, %p515_p1 }
  0x19   : > { %p511_p0 = pneg %p510_p13 }
  0x1b   : > { %p518_p2 = pnand %p517_p3, %p511_p0 }
  0x1d   : > { %521 = shalt.err (!%p518_p2)
}
  0x1e   : > { %s535_s7 = smov 128   ;;  %s536_s8 = smov 8  }
  0x1f   : > { %475 = dma.hbm_to_vmem [thread:$0]  (!%p590_p5), %s638_s2, 512, %s175_s21, [#allocation3], %s535_s7, %s535_s7, %s536_s8  }
  0x20   : > { %p646_p6 = scmp.ne.s32.totalorder %s644_s22, 0 }
  0x21   : > { %p647_p8 = scmp.eq.s32.totalorder (!%p646_p6), %s577_s19, 0 }
  0x22   : > { %210 = sbr.rel (%p646_p6) target bundleno = 268 (0x10c), region = 40 }
  0x29   : > { %527 = dma.done.wait (%p647_p8), [#allocation3], 512   ;;  %p648_p7 = pmov %p647_p8 }
  0x2a   : > { %p240_p2 = scmp.lt.s32.totalorder %s577_s19, 1  ;;  %v537_v0 = vmov 0.0|0.0   ;;  %vm538_vm0 = vmmov 0   ;;  %v539_v1 = vmov 0.0   ;;  %v540_v2 = vmov 0   ;;  %v253_v3 = vld [vmem:[#allocation2] sm:$0xff] }
  0x2b   : > { %529 = vsyncadd (%p648_p7), [#allocation3], 4294966784  ;;  %462 = vmatprep.subr.bf16.mxu0 %v537_v0  ;;  %459 = vmatprep.mubr.msk.f32.mxu0 %vm538_vm0, %v539_v1  ;;  %v254_v4 = vld [vmem:[#allocation2 + $0x8] sm:$0xff]  ;;  %v255_v5 = vld [vmem:[#allocation2 + $0x10] sm:$0xff]  ;;  %vm279_vm1 = vcmask 261120  }
  0x2c   : > { %s650_s19 = smov (!%p240_p2, %s577_s19), 1  ;;  %493 = vset.pattern.permute.xlu0 %v540_v2  ;;  %v463_v6 = vpack.c.bf16 %v254_v4, %v253_v3  ;;  %v256_v7 = vld [vmem:[#allocation2 + $0x18] sm:$0xff]  ;;  %v441_v11 = vld [vmem:[%s639_s3] ss:$0 sm:$0xff] }
  0x2d   : > { %s438_s11 = sshll.u32 %s650_s19, 3  ;;  %v466_v9 = vpack.c.bf16 %v256_v7, %v255_v5  ;;  %v442_v14 = vld [vmem:[%s640_s4] ss:$0 sm:$0xff] }
  0x2e   : > { %s247_s14 = scalar_lea.vmem %s637_s1, %s438_s11  ;;  %464 = vmatpush3.bf16.msra.mxu0 %v463_v6  ;;  %s243_s17 = scalar_lea.vmem %s636_s0, %s438_s11 }
  0x2f   : > { %v257_v8 = vld [vmem:[%s247_s14] sm:$0xff]  ;;  %465 = vmatprep.subr.bf16.mxu0 %v537_v0  ;;  %s251_s25 = scalar_lea.vmem %s641_s5, %s438_s11 }
  0x30   : > { %261 = vperm.xlu0 %493, %v257_v8   ;;  %v252_v10 = vld [vmem:[%s243_s17] sm:$0xff] }
  0x32   : > { %467 = vmatpush3.bf16.msra.mxu0 %v466_v9 }
  0x35   : > { %460 = vmatmul.mubr.msk.f32.vlgmr.msra.gmra.mrb[0].mxu0 %vm279_vm1, %v252_v10 }
  0xaf   : > { %v262_v12 = vpop.permute.xlu0 %261 }
  0xb0   : > { %v270_v13 = vmul.f32 %v441_v11, %v262_v12 }
  0xb2   : > { %v278_v15 = vadd.f32 %v442_v14, %v270_v13 }
 0x108   : > { %v349_v16 = vpop.f32.mrb[0].mxu0 }
 0x109   : > { %v350_v17 = vadd.f32 %v349_v16, %v278_v15  ;;  %v461_v18 = vpop.f32.mrb[1].mxu0 }
 0x10b   : > { %353 = vst [vmem:[%s251_s25] sm:$0xff] %v350_v17 }
 0x10c PF: > { %s16_s18 = sadd.s32 1, %s532_s18  }
 0x10d   : > { %p13_p3 = scmp.ge.s32.totalorder %s16_s18, 4  }
 0x10f   :  { %15 = sbr.rel (!%p13_p3) target bundleno = 1 (0x1), region = 78 }
 0x116   :  { %373 = vsyncpa [#allocation3], 1 }
 0x117   :  { %375 = vsyncpa [#allocation3 + $0x1], 1 }

</bundles_post_ra>
